<compile_context>
chip_gen: v5e
topology: v5e:2x2
jax: 0.10.0
libtpu: 0.0.40
codegen_flags: <defaults>
</compile_context>

<pallas_src>
import math
import functools

import jax
import jax.numpy as jnp
from jax.experimental import pallas as pl
from jax.experimental.pallas import tpu as pltpu


_VMEM_LIMIT = 64 * 1024 * 1024  # safe on v5e/v6e (128 MiB) and v7x (64 MiB)


def _pick_tile(dim, max_tile):
    """Largest power-of-two tile <= max_tile that divides dim, else full dim."""
    t = max_tile
    while t >= 8:
        if dim % t == 0:
            return t
        t //= 2
    return dim


# ----------------------------------------------------------------------------
# Kernels
# ----------------------------------------------------------------------------
def _qkv_proj_kernel(x_ref, wq_ref, bq_ref, wk_ref, bk_ref, wv_ref, bv_ref,
                     q_ref, k_ref, v_ref):
    # x: (tm, d_model); wq/wk: (d_model, h*q); wv: (d_model, h*v)
    # Fused: read x once, emit Q/K/V projections.  f32 accumulation on MXU.
    x = x_ref[...].astype(wq_ref.dtype)
    for w_ref, b_ref, o_ref in (
        (wq_ref, bq_ref, q_ref),
        (wk_ref, bk_ref, k_ref),
        (wv_ref, bv_ref, v_ref),
    ):
        acc = jnp.dot(x, w_ref[...], preferred_element_type=jnp.float32)
        o_ref[...] = (acc + b_ref[...]).astype(o_ref.dtype)


def pallas_qkv_proj(x2d, wq, bq, wk, bk, wv, bv, *, out_dtype, tm=512):
    """x2d: (M, d_model) -> Qp (M, h*q), Kp (M, h*q), Vp (M, h*v)."""
    M, K = x2d.shape
    Nq = wq.shape[1]
    Nv = wv.shape[1]
    tm = _pick_tile(M, tm)
    return pl.pallas_call(
        _qkv_proj_kernel,
        out_shape=(
            jax.ShapeDtypeStruct((M, Nq), out_dtype),
            jax.ShapeDtypeStruct((M, Nq), out_dtype),
            jax.ShapeDtypeStruct((M, Nv), out_dtype),
        ),
        grid=(M // tm,),
        in_specs=[
            pl.BlockSpec((tm, K), lambda i: (i, 0)),
            pl.BlockSpec((K, Nq), lambda i: (0, 0)),
            pl.BlockSpec((1, Nq), lambda i: (0, 0)),
            pl.BlockSpec((K, Nq), lambda i: (0, 0)),
            pl.BlockSpec((1, Nq), lambda i: (0, 0)),
            pl.BlockSpec((K, Nv), lambda i: (0, 0)),
            pl.BlockSpec((1, Nv), lambda i: (0, 0)),
        ],
        out_specs=(
            pl.BlockSpec((tm, Nq), lambda i: (i, 0)),
            pl.BlockSpec((tm, Nq), lambda i: (i, 0)),
            pl.BlockSpec((tm, Nv), lambda i: (i, 0)),
        ),
        compiler_params=pltpu.CompilerParams(
            dimension_semantics=("parallel",),
            vmem_limit_bytes=_VMEM_LIMIT,
        ),
    )(x2d, wq, bq.reshape(1, Nq), wk, bk.reshape(1, Nq), wv, bv.reshape(1, Nv))


def _linear_kernel(x_ref, w_ref, b_ref, o_ref):
    # x: (tm, K), w: (K, tn), b: (1, tn) -> o: (tm, tn)
    x = x_ref[...].astype(w_ref.dtype)
    acc = jnp.dot(x, w_ref[...], preferred_element_type=jnp.float32)
    o_ref[...] = (acc + b_ref[...]).astype(o_ref.dtype)


def pallas_linear(x2d, w, b, *, out_dtype, tm=512, tn=512):
    """Tiled y = x @ W + b.  Tiles M and N; K kept whole (small for this model)."""
    M, K = x2d.shape
    N = w.shape[1]
    tm = _pick_tile(M, tm)
    tn = _pick_tile(N, tn)
    return pl.pallas_call(
        _linear_kernel,
        out_shape=jax.ShapeDtypeStruct((M, N), out_dtype),
        grid=(M // tm, N // tn),
        in_specs=[
            pl.BlockSpec((tm, K), lambda i, j: (i, 0)),
            pl.BlockSpec((K, tn), lambda i, j: (0, j)),
            pl.BlockSpec((1, tn), lambda i, j: (0, j)),
        ],
        out_specs=pl.BlockSpec((tm, tn), lambda i, j: (i, j)),
        compiler_params=pltpu.CompilerParams(
            dimension_semantics=("parallel", "parallel"),
            vmem_limit_bytes=_VMEM_LIMIT,
        ),
    )(x2d, w, b.reshape(1, N))


def _attention_kernel(q_ref, k_ref, v_ref, attn_ref, score_ref, *,
                      h, dq, dv, scale, causal):
    # One grid step == one (batch, query-tile) pair; all heads processed here
    # so the attention output is written directly in concatenated layout.
    #   q_ref:    (1, tq, h*dq)
    #   k_ref:    (1, S,  h*dq)
    #   v_ref:    (1, S,  h*dv)
    #   attn_ref: (1, tq, h*dv)
    #   score_ref:(h, 1, tq, S)   (pre-mask, pre-softmax — module semantics)
    tq = q_ref.shape[1]
    S = k_ref.shape[1]
    row_off = pl.program_id(1) * tq

    for hh in range(h):
        q_h = q_ref[0, :, hh * dq:(hh + 1) * dq]   # (tq, dq)
        k_h = k_ref[0, :, hh * dq:(hh + 1) * dq]   # (S, dq)
        v_h = v_ref[0, :, hh * dv:(hh + 1) * dv]   # (S, dv)

        # Q @ K^T: contract last dims, no explicit transpose.
        s = jax.lax.dot_general(
            q_h, k_h, (((1,), (1,)), ((), ())),
            preferred_element_type=jnp.float32) * scale      # (tq, S) f32

        score_ref[hh, 0, :, :] = s

        if causal:
            rows = jax.lax.broadcasted_iota(jnp.int32, (tq, S), 0) + row_off
            cols = jax.lax.broadcasted_iota(jnp.int32, (tq, S), 1)
            s = jnp.where(cols <= rows, s, jnp.float32(-(2.0 ** 32) + 1.0))

        m = jnp.max(s, axis=-1, keepdims=True)
        p = jnp.exp(s - m)
        l = jnp.sum(p, axis=-1, keepdims=True)
        probs = p * pl.reciprocal(l, approx=True)            # EUP vrcp

        attn_h = jnp.dot(probs.astype(v_h.dtype), v_h,
                         preferred_element_type=jnp.float32)  # (tq, dv)
        attn_ref[0, :, hh * dv:(hh + 1) * dv] = attn_h.astype(attn_ref.dtype)


def pallas_attention(Qp, Kp, Vp, *, h, dq, dv, causal, tq=128):
    """Qp/Kp: (B, S, h*dq), Vp: (B, S, h*dv) in projection layout.

    Returns:
      attn:  (B, S, h*dv)  -- already head-concatenated (ready for W_o)
      score: (h*B, S, S)   -- pre-mask / pre-softmax, head-major (torch layout)
    """
    B, S, HQ = Qp.shape
    HV = Vp.shape[-1]
    tq = _pick_tile(S, tq)
    kernel = functools.partial(
        _attention_kernel, h=h, dq=dq, dv=dv,
        scale=1.0 / math.sqrt(dq), causal=causal)
    attn, score4 = pl.pallas_call(
        kernel,
        out_shape=(
            jax.ShapeDtypeStruct((B, S, HV), Vp.dtype),
            jax.ShapeDtypeStruct((h, B, S, S), jnp.float32),
        ),
        grid=(B, S // tq),
        in_specs=[
            pl.BlockSpec((1, tq, HQ), lambda b, qi: (b, qi, 0)),
            pl.BlockSpec((1, S, HQ), lambda b, qi: (b, 0, 0)),
            pl.BlockSpec((1, S, HV), lambda b, qi: (b, 0, 0)),
        ],
        out_specs=(
            pl.BlockSpec((1, tq, HV), lambda b, qi: (b, qi, 0)),
            pl.BlockSpec((h, 1, tq, S), lambda b, qi: (0, b, qi, 0)),
        ),
        compiler_params=pltpu.CompilerParams(
            dimension_semantics=("parallel", "parallel"),
            vmem_limit_bytes=_VMEM_LIMIT,
        ),
    )(Qp, Kp, Vp)
    # (h, B, S, S) -> (h*B, S, S) is a free (contiguous) reshape.
    return attn, score4.reshape(h * B, S, S)


# ----------------------------------------------------------------------------
# Module wrapper
# ----------------------------------------------------------------------------
def init_params(key, d_model, q, v, h):
    """PyTorch Linear init (y = x @ W^T + b); weights stored as (in, out)."""
    ks = jax.random.split(key, 8)

    def lin(kw, kb, fan_in, fan_out):
        bound = 1.0 / math.sqrt(fan_in)
        w = jax.random.uniform(kw, (fan_in, fan_out), jnp.float32, -bound, bound)
        b = jax.random.uniform(kb, (fan_out,), jnp.float32, -bound, bound)
        return w, b

    return {
        "W_q": lin(ks[0], ks[1], d_model, q * h),
        "W_k": lin(ks[2], ks[3], d_model, q * h),
        "W_v": lin(ks[4], ks[5], d_model, v * h),
        "W_o": lin(ks[6], ks[7], v * h, d_model),
    }


def multi_head_attention(params, x, *, q, v, h, mask=False, stage="test",
                         use_bf16=False, tq=128, tm=512):
    """Reproduces MultiHeadAttention.forward. Returns (self_attention, score).

    x: (B, S, d_model) float32
    self_attention: (B, S, d_model) f32;  score: (h*B, S, S) f32 (pre-mask).
    use_bf16: run the MXU matmuls with bf16 operands / f32 accumulation
    (perf mode on v6e/v7x; slightly looser numerics).
    """
    B, S, d_model = x.shape
    compute_dtype = jnp.bfloat16 if use_bf16 else jnp.float32
    x2d = x.reshape(B * S, d_model)

    wq, bq = params["W_q"]
    wk, bk = params["W_k"]
    wv, bv = params["W_v"]
    wo, bo = params["W_o"]
    if use_bf16:
        wq = wq.astype(compute_dtype)
        wk = wk.astype(compute_dtype)
        wv = wv.astype(compute_dtype)
        wo = wo.astype(compute_dtype)

    # --- fused Q/K/V projection (x read once) ---
    Qp, Kp, Vp = pallas_qkv_proj(x2d, wq, bq, wk, bk, wv, bv,
                                 out_dtype=compute_dtype, tm=tm)
    Qp = Qp.reshape(B, S, h * q)
    Kp = Kp.reshape(B, S, h * q)
    Vp = Vp.reshape(B, S, h * v)

    # --- attention (heads split/concat handled inside the kernel) ---
    causal = bool(mask and stage == "train")
    attn, score = pallas_attention(Qp, Kp, Vp, h=h, dq=q, dv=v,
                                   causal=causal, tq=tq)

    # --- output projection (attn is already in (B, S, h*v) concat layout) ---
    out = pallas_linear(attn.reshape(B * S, h * v), wo, bo,
                        out_dtype=jnp.float32, tm=tm).reshape(B, S, d_model)
    # NOTE: nn.Dropout is defined in __init__ but never applied in forward().
    return out, score


# ----------------------------------------------------------------------------
# Reference (pure JAX, f32) for sanity check
# ----------------------------------------------------------------------------
def reference_mha(params, x, *, q, v, h, mask=False, stage="test"):
    B, S, d_model = x.shape
    hp = jax.lax.Precision.HIGHEST

    def lin(t, wb):
        w, b = wb
        return jnp.einsum("bsd,dn->bsn", t, w, precision=hp) + b

    def to_heads(t, d_head):
        return (
            t.reshape(B, S, h, d_head).transpose(2, 0, 1, 3).reshape(h * B, S, d_head)
        )

    Q = to_heads(lin(x, params["W_q"]), q)
    K = to_heads(lin(x, params["W_k"]), q)
    V = to_heads(lin(x, params["W_v"]), v)
    score = jnp.einsum("bik,bjk->bij", Q, K, precision=hp) / math.sqrt(q)
    s = score
    if mask and stage == "train":
        tri = jnp.tril(jnp.ones((S, S)))
        s = jnp.where(tri > 0, s, jnp.float32(-(2.0 ** 32) + 1.0))
    probs = jax.nn.softmax(s, axis=-1)
    attn = jnp.einsum("bij,bjd->bid", probs, V, precision=hp)
    heads = attn.reshape(h, B, S, v).transpose(1, 2, 0, 3).reshape(B, S, h * v)
    return lin(heads, params["W_o"]), score


# ----------------------------------------------------------------------------
if __name__ == "__main__":
    B, S, d_model = 2, 8, 32
    q_dim, v_dim, h = 8, 8, 4

    key = jax.random.PRNGKey(0)
    kp, kx = jax.random.split(key)
    params = init_params(kp, d_model, q_dim, v_dim, h)
    x = jax.random.normal(kx, (B, S, d_model), jnp.float32)

    # --- f32 path, no mask ---
    out, score = multi_head_attention(
        params, x, q=q_dim, v=v_dim, h=h, mask=False, stage="test")
    out = jax.block_until_ready(out)
    score = jax.block_until_ready(score)

    ref_out, ref_score = reference_mha(
        params, x, q=q_dim, v=v_dim, h=h, mask=False, stage="test")

    assert out.shape == (B, S, d_model)
    assert score.shape == (h * B, S, S)
    assert jnp.allclose(score, ref_score, atol=1e-4, rtol=1e-4)
    assert jnp.allclose(out, ref_out, atol=1e-3, rtol=1e-3)

    # --- f32 path, causal mask (train) ---
    out_m, score_m = multi_head_attention(
        params, x, q=q_dim, v=v_dim, h=h, mask=True, stage="train")
    out_m = jax.block_until_ready(out_m)
    ref_out_m, ref_score_m = reference_mha(
        params, x, q=q_dim, v=v_dim, h=h, mask=True, stage="train")
    assert jnp.allclose(score_m, ref_score_m, atol=1e-4, rtol=1e-4)
    assert jnp.allclose(out_m, ref_out_m, atol=1e-3, rtol=1e-3)

    # --- bf16 MXU path (perf mode) ---
    out_b, score_b = multi_head_attention(
        params, x, q=q_dim, v=v_dim, h=h, mask=False, stage="test", use_bf16=True)
    out_b = jax.block_until_ready(out_b)
    assert jnp.allclose(out_b, ref_out, atol=5e-2, rtol=5e-2)
    assert jnp.allclose(score_b, ref_score, atol=5e-2, rtol=5e-2)

    print("KERNEL_OK")
</pallas_src>

<mosaic_0001>
module attributes {stable_mosaic.version = 11 : i64} {
  func.func @_qkv_proj_kernel(%arg0: i32, %arg1: memref<16x32xf32, #tpu.memory_space<vmem>>, %arg2: memref<32x32xf32, #tpu.memory_space<vmem>>, %arg3: memref<1x32xf32, #tpu.memory_space<vmem>>, %arg4: memref<32x32xf32, #tpu.memory_space<vmem>>, %arg5: memref<1x32xf32, #tpu.memory_space<vmem>>, %arg6: memref<32x32xf32, #tpu.memory_space<vmem>>, %arg7: memref<1x32xf32, #tpu.memory_space<vmem>>, %arg8: memref<16x32xf32, #tpu.memory_space<vmem>>, %arg9: memref<16x32xf32, #tpu.memory_space<vmem>>, %arg10: memref<16x32xf32, #tpu.memory_space<vmem>>) attributes {dimension_semantics = [#tpu.dimension_semantics<parallel>], iteration_bounds = array<i64: 1>, scalar_prefetch = 0 : i64, scratch_operands = 0 : i64, tpu.core_type = #tpu.core_type<tc>, window_params = [{transform_indices = @transform_0, window_bounds = array<i64: 16, 32>}, {pipeline_mode = #tpu.pipeline_mode<synchronous>, transform_indices = @transform_1, window_bounds = array<i64: 32, 32>}, {pipeline_mode = #tpu.pipeline_mode<synchronous>, transform_indices = @transform_2, window_bounds = array<i64: 1, 32>}, {pipeline_mode = #tpu.pipeline_mode<synchronous>, transform_indices = @transform_3, window_bounds = array<i64: 32, 32>}, {pipeline_mode = #tpu.pipeline_mode<synchronous>, transform_indices = @transform_4, window_bounds = array<i64: 1, 32>}, {pipeline_mode = #tpu.pipeline_mode<synchronous>, transform_indices = @transform_5, window_bounds = array<i64: 32, 32>}, {pipeline_mode = #tpu.pipeline_mode<synchronous>, transform_indices = @transform_6, window_bounds = array<i64: 1, 32>}, {transform_indices = @transform_7, window_bounds = array<i64: 16, 32>}, {transform_indices = @transform_8, window_bounds = array<i64: 16, 32>}, {transform_indices = @transform_9, window_bounds = array<i64: 16, 32>}]} {
    %c0 = arith.constant 0 : index
    %c0_0 = arith.constant 0 : index
    %0 = vector.load %arg1[%c0, %c0_0] : memref<16x32xf32, #tpu.memory_space<vmem>>, vector<16x32xf32>
    %c0_1 = arith.constant 0 : index
    %c0_2 = arith.constant 0 : index
    %1 = vector.load %arg2[%c0_1, %c0_2] : memref<32x32xf32, #tpu.memory_space<vmem>>, vector<32x32xf32>
    %cst = arith.constant dense<0.000000e+00> : vector<16x32xf32>
    %2 = tpu.matmul %0, %1, %cst {dimension_numbers = #tpu.dot_dimension_numbers<[1], [0], [0], [1], [0, 0, 1, 1], [], []>} : vector<16x32xf32>, vector<32x32xf32>, vector<16x32xf32> -> vector<16x32xf32>
    %c0_3 = arith.constant 0 : index
    %c0_4 = arith.constant 0 : index
    %3 = vector.load %arg3[%c0_3, %c0_4] : memref<1x32xf32, #tpu.memory_space<vmem>>, vector<1x32xf32>
    %4 = vector.broadcast %3 : vector<1x32xf32> to vector<16x32xf32>
    %5 = arith.addf %2, %4 : vector<16x32xf32>
    %c0_5 = arith.constant 0 : index
    %c0_6 = arith.constant 0 : index
    %6 = vector.load %arg8[%c0_5, %c0_6] : memref<16x32xf32, #tpu.memory_space<vmem>>, vector<16x32xf32>
    tpu.vector_store %arg8[%c0_5, %c0_6], %5 {strides = array<i32>} : memref<16x32xf32, #tpu.memory_space<vmem>>, vector<16x32xf32>,
    %c0_7 = arith.constant 0 : index
    %c0_8 = arith.constant 0 : index
    %7 = vector.load %arg4[%c0_7, %c0_8] : memref<32x32xf32, #tpu.memory_space<vmem>>, vector<32x32xf32>
    %cst_9 = arith.constant dense<0.000000e+00> : vector<16x32xf32>
    %8 = tpu.matmul %0, %7, %cst_9 {dimension_numbers = #tpu.dot_dimension_numbers<[1], [0], [0], [1], [0, 0, 1, 1], [], []>} : vector<16x32xf32>, vector<32x32xf32>, vector<16x32xf32> -> vector<16x32xf32>
    %c0_10 = arith.constant 0 : index
    %c0_11 = arith.constant 0 : index
    %9 = vector.load %arg5[%c0_10, %c0_11] : memref<1x32xf32, #tpu.memory_space<vmem>>, vector<1x32xf32>
    %10 = vector.broadcast %9 : vector<1x32xf32> to vector<16x32xf32>
    %11 = arith.addf %8, %10 : vector<16x32xf32>
    %c0_12 = arith.constant 0 : index
    %c0_13 = arith.constant 0 : index
    %12 = vector.load %arg9[%c0_12, %c0_13] : memref<16x32xf32, #tpu.memory_space<vmem>>, vector<16x32xf32>
    tpu.vector_store %arg9[%c0_12, %c0_13], %11 {strides = array<i32>} : memref<16x32xf32, #tpu.memory_space<vmem>>, vector<16x32xf32>,
    %c0_14 = arith.constant 0 : index
    %c0_15 = arith.constant 0 : index
    %13 = vector.load %arg6[%c0_14, %c0_15] : memref<32x32xf32, #tpu.memory_space<vmem>>, vector<32x32xf32>
    %cst_16 = arith.constant dense<0.000000e+00> : vector<16x32xf32>
    %14 = tpu.matmul %0, %13, %cst_16 {dimension_numbers = #tpu.dot_dimension_numbers<[1], [0], [0], [1], [0, 0, 1, 1], [], []>} : vector<16x32xf32>, vector<32x32xf32>, vector<16x32xf32> -> vector<16x32xf32>
    %c0_17 = arith.constant 0 : index
    %c0_18 = arith.constant 0 : index
    %15 = vector.load %arg7[%c0_17, %c0_18] : memref<1x32xf32, #tpu.memory_space<vmem>>, vector<1x32xf32>
    %16 = vector.broadcast %15 : vector<1x32xf32> to vector<16x32xf32>
    %17 = arith.addf %14, %16 : vector<16x32xf32>
    %c0_19 = arith.constant 0 : index
    %c0_20 = arith.constant 0 : index
    %18 = vector.load %arg10[%c0_19, %c0_20] : memref<16x32xf32, #tpu.memory_space<vmem>>, vector<16x32xf32>
    tpu.vector_store %arg10[%c0_19, %c0_20], %17 {strides = array<i32>} : memref<16x32xf32, #tpu.memory_space<vmem>>, vector<16x32xf32>,
    return
  }
  func.func @transform_0(%arg0: i32) -> (i32, i32) {
    %c0_i32 = arith.constant 0 : i32
    %c0_i32_0 = arith.constant 0 : i32
    return %arg0, %c0_i32 : i32, i32
  }
  func.func @transform_1(%arg0: i32) -> (i32, i32) {
    %c0_i32 = arith.constant 0 : i32
    %c0_i32_0 = arith.constant 0 : i32
    %c0_i32_1 = arith.constant 0 : i32
    return %c0_i32, %c0_i32_0 : i32, i32
  }
  func.func @transform_2(%arg0: i32) -> (i32, i32) {
    %c0_i32 = arith.constant 0 : i32
    %c0_i32_0 = arith.constant 0 : i32
    %c0_i32_1 = arith.constant 0 : i32
    return %c0_i32, %c0_i32_0 : i32, i32
  }
  func.func @transform_3(%arg0: i32) -> (i32, i32) {
    %c0_i32 = arith.constant 0 : i32
    %c0_i32_0 = arith.constant 0 : i32
    %c0_i32_1 = arith.constant 0 : i32
    return %c0_i32, %c0_i32_0 : i32, i32
  }
  func.func @transform_4(%arg0: i32) -> (i32, i32) {
    %c0_i32 = arith.constant 0 : i32
    %c0_i32_0 = arith.constant 0 : i32
    %c0_i32_1 = arith.constant 0 : i32
    return %c0_i32, %c0_i32_0 : i32, i32
  }
  func.func @transform_5(%arg0: i32) -> (i32, i32) {
    %c0_i32 = arith.constant 0 : i32
    %c0_i32_0 = arith.constant 0 : i32
    %c0_i32_1 = arith.constant 0 : i32
    return %c0_i32, %c0_i32_0 : i32, i32
  }
  func.func @transform_6(%arg0: i32) -> (i32, i32) {
    %c0_i32 = arith.constant 0 : i32
    %c0_i32_0 = arith.constant 0 : i32
    %c0_i32_1 = arith.constant 0 : i32
    return %c0_i32, %c0_i32_0 : i32, i32
  }
  func.func @transform_7(%arg0: i32) -> (i32, i32) {
    %c0_i32 = arith.constant 0 : i32
    %c0_i32_0 = arith.constant 0 : i32
    return %arg0, %c0_i32 : i32, i32
  }
  func.func @transform_8(%arg0: i32) -> (i32, i32) {
    %c0_i32 = arith.constant 0 : i32
    %c0_i32_0 = arith.constant 0 : i32
    return %arg0, %c0_i32 : i32, i32
  }
  func.func @transform_9(%arg0: i32) -> (i32, i32) {
    %c0_i32 = arith.constant 0 : i32
    %c0_i32_0 = arith.constant 0 : i32
    return %arg0, %c0_i32 : i32, i32
  }
}

</mosaic_0001>

<bundles_post_ra>
// kernel: tpu_custom_call.1
= control target key start
LH: loop header
LB: loop body
LE: loop exit
PB: predicated region body
PF: predicated region fallthrough
CT: control target
= control target key end

     0   :  { %15 = vsyncpa [#allocation3], 0  ;;  %s580_s0 = inlined_call_operand.hbm [shape: f32[16,32], index: 0, kind: input, shape index: {}]   ;;  %s581_s1 = inlined_call_operand.hbm [shape: f32[32,32], index: 1, kind: input, shape index: {}]   ;;  %s582_s2 = inlined_call_operand.vmem [shape: f32[1,32], index: 2, kind: input, shape index: {}]   ;;  %s583_s3 = inlined_call_operand.hbm [shape: f32[32,32], index: 3, kind: input, shape index: {}]   ;;  %s584_s4 = inlined_call_operand.vmem [shape: f32[1,32], index: 4, kind: input, shape index: {}]   ;;  %s585_s5 = inlined_call_operand.hbm [shape: f32[32,32], index: 5, kind: input, shape index: {}]   ;;  %s586_s6 = inlined_call_operand.vmem [shape: f32[1,32], index: 6, kind: input, shape index: {}]   ;;  %s587_s7 = inlined_call_operand.hbm [shape: f32[16,32], index: 7, kind: output, shape index: {0}]   ;;  %s588_s8 = inlined_call_operand.hbm [shape: f32[16,32], index: 8, kind: output, shape index: {1}]   ;;  %s589_s9 = inlined_call_operand.hbm [shape: f32[16,32], index: 9, kind: output, shape index: {2}]  }
   0x1   :  { %16 = vsyncpa [#allocation6], 0 }
   0x2   :  { %17 = vsyncpa [#allocation9], 0 }
   0x3   :  { %18 = vsyncpa [#allocation4], 0 }
   0x4   :  { %19 = vsyncpa [#allocation12], 0  ;;  %s37_s11 = sshll.u32 %s581_s1, 4  ;;  %s458_s12 = smov [#allocation5]   ;;  %s38_s11 = int_to_ptr.hbm [resolvable:$true] %s37_s11 }
   0x5   :  { %s39_s13 = sshll.u32 %s458_s12, 4  ;;  %s24_s16 = sshll.u32 %s580_s0, 4  ;;  %s40_s13 = int_to_ptr.vmem [resolvable:$true] %s39_s13  ;;  %s25_s16 = int_to_ptr.hbm [resolvable:$true] %s24_s16 }
   0x6   :  { %s459_s17 = smov 128   ;;  %s460_s18 = smov 8  }
   0x7   :  { %45 = dma.hbm_to_vmem [thread:$0]  %s38_s11, 512, %s40_s13, [#allocation6], %s459_s17, %s459_s17, %s460_s18  }
   0x8   :  { %s461_s19 = smov [#allocation2]   ;;  %s52_s1 = sshll.u32 %s583_s3, 4  ;;  %s53_s1 = int_to_ptr.hbm [resolvable:$true] %s52_s1 }
   0x9   :  { %s26_s20 = sshll.u32 %s461_s19, 4  ;;  %s67_s24 = sshll.u32 %s585_s5, 4  ;;  %s27_s20 = int_to_ptr.vmem [resolvable:$true] %s26_s20  ;;  %s68_s24 = int_to_ptr.hbm [resolvable:$true] %s67_s24 }
   0xa   :  { %32 = dma.hbm_to_vmem [thread:$0]  %s25_s16, 256, %s27_s20, [#allocation3], %s459_s17, %s459_s17, %s460_s18  }
   0xb   :  { %s462_s25 = smov [#allocation7]   ;;  %s463_s27 = smov [#allocation8]  }
   0xc   :  { %s54_s26 = sshll.u32 %s462_s25, 4  ;;  %s69_s3 = sshll.u32 %s463_s27, 4  ;;  %s55_s26 = int_to_ptr.vmem [resolvable:$true] %s54_s26  ;;  %s70_s3 = int_to_ptr.vmem [resolvable:$true] %s69_s3 }
   0xd   :  { %60 = dma.hbm_to_vmem [thread:$0]  %s53_s1, 512, %s55_s26, [#allocation6], %s459_s17, %s459_s17, %s460_s18  }
   0xe   :  { %75 = dma.hbm_to_vmem [thread:$0]  %s68_s24, 512, %s70_s3, [#allocation9], %s459_s17, %s459_s17, %s460_s18  }
   0xf   :  { %448 = dma.done.wait [#allocation3], 256  }
  0x10   :  { %449 = vsyncadd [#allocation3], 4294967040 }
  0x11   :  { %450 = dma.done.wait [#allocation6], 1024  }
  0x12   :  { %451 = vsyncadd [#allocation6], 4294966272 }
  0x13   :  { %452 = dma.done.wait [#allocation9], 512  }
  0x14   :  { %453 = vsyncadd [#allocation9], 4294966784  ;;  %v172_v0 = vld [vmem:[#allocation8 + $0x18] sm:$0xff]  ;;  %v171_v1 = vld [vmem:[#allocation8 + $0x10] sm:$0xff]  ;;  %vm104_vm0 = vcmask 261120   ;;  %s464_s12 = smov [#allocation10]  }
  0x15   :  { %189 = vmatpush.msra.mxu2 %v172_v0  ;;  %v139_v2 = vld [vmem:[#allocation7 + $0x18] sm:$0xff]  ;;  %v138_v3 = vld [vmem:[#allocation7 + $0x10] sm:$0xff]  ;;  %v170_v4 = vld [vmem:[#allocation8 + $0x8] sm:$0xff]  ;;  %s206_s13 = sshll.u32 %s464_s12, 4  ;;  %s465_s16 = smov [#allocation11]   ;;  %s207_s13 = int_to_ptr.vmem [resolvable:$true] %s206_s13 }
  0x16   :  { %156 = vmatpush.msra.mxu1 %v139_v2  ;;  %v99_v5 = vld [vmem:[#allocation5 + $0x18] sm:$0xff]  ;;  %v169_v6 = vld [vmem:[#allocation8] sm:$0xff]  ;;  %v137_v7 = vld [vmem:[#allocation7 + $0x8] sm:$0xff]  ;;  %s219_s19 = sshll.u32 %s465_s16, 4  ;;  %s221_s21 = sshll.u32 %s588_s8, 4  ;;  %s220_s19 = int_to_ptr.vmem [resolvable:$true] %s219_s19  ;;  %s222_s21 = int_to_ptr.hbm [resolvable:$true] %s221_s21 }
  0x17   :  { %190 = vmatpush.msra.mxu2 %v171_v1  ;;  %264 = vmatpush.msra.mxu3 %v99_v5  ;;  %v98_v8 = vld [vmem:[#allocation5 + $0x10] sm:$0xff]  ;;  %v97_v10 = vld [vmem:[#allocation5 + $0x8] sm:$0xff]  ;;  %v136_v11 = vld [vmem:[#allocation7] sm:$0xff]  ;;  %s234_s8 = sshll.u32 %s589_s9, 4  ;;  %s235_s8 = int_to_ptr.hbm [resolvable:$true] %s234_s8 }
  0x18   :  { %157 = vmatpush.msra.mxu1 %v138_v3  ;;  %v94_v9 = vld [vmem:[#allocation2] sm:$0xff]  ;;  %123 = vmatpush.msra.mxu0 %v99_v5  ;;  %v96_v12 = vld [vmem:[#allocation5] sm:$0xff]  ;;  %v95_v13 = vld [vmem:[#allocation2 + $0x8] sm:$0xff] }
  0x19   :  { %191 = vmatpush.msra.mxu2 %v170_v4  ;;  %265 = vmatpush.msra.mxu3 %v98_v8  ;;  %v277_v14 = vld [vmem:[%s584_s4] ss:$0 sm:$0xff]  ;;  %s208_s4 = sshll.u32 %s587_s7, 4  ;;  %s209_s4 = int_to_ptr.hbm [resolvable:$true] %s208_s4 }
  0x1a   :  { %158 = vmatpush.msra.mxu1 %v137_v7  ;;  %124 = vmatpush.msra.mxu0 %v98_v8  ;;  %v279_v17 = vld [vmem:[%s582_s2] ss:$0 sm:$0xff] }
  0x1b   :  { %192 = vmatpush.msra.mxu2 %v169_v6  ;;  %266 = vmatpush.msra.mxu3 %v97_v10  ;;  %v278_v18 = vld [vmem:[%s586_s6] ss:$0 sm:$0xff]  ;;  %s466_s6 = smov [#allocation13]  }
  0x1c   :  { %262 = vmatmul.msk.f32.vlgmr.msra.gmra.mxu2 %vm104_vm0, %v94_v9  ;;  %159 = vmatpush.msra.mxu1 %v136_v11  ;;  %s232_s7 = sshll.u32 %s466_s6, 4  ;;  %s233_s7 = int_to_ptr.vmem [resolvable:$true] %s232_s7 }
  0x1d   :  { %260 = vmatmul.msk.f32.vlgmr.msra.gmra.mxu1 %vm104_vm0, %v94_v9  ;;  %267 = vmatpush.msra.mxu3 %v96_v12 }
  0x1e   :  { %259 = vmatmul.msk.f32.vlgmr.msra.gmra.mxu3 %vm104_vm0, %v95_v13  ;;  %125 = vmatpush.msra.mxu0 %v97_v10 }
  0x20   :  { %126 = vmatpush.msra.mxu0 %v96_v12 }
  0x21   :  { %258 = vmatmul.msk.f32.vlgmr.msra.gmra.mxu0 %vm104_vm0, %v94_v9 }
  0x24   :  { %263 = vmatmul.msk.f32.gmra.mxu2 %vm104_vm0, %v95_v13 }
  0x25   :  { %261 = vmatmul.msk.f32.gmra.mxu1 %vm104_vm0, %v95_v13 }
  0x9a   :  { %v161_v15 = vpop.f32.mrf.mxu1 }
  0x9b   :  { %v162_v16 = vadd.f32 %v277_v14, %v161_v15 }
  0x9d   :  { %167 = vst.msk [vmem:[#allocation11] sm:$0xff] %vm104_vm0, %v162_v16 }
  0x9e   :  { %v128_v19 = vpop.f32.mrf.mxu0 }
  0x9f   :  { %v194_v20 = vpop.f32.mrf.mxu2  ;;  %v129_v21 = vadd.f32 %v279_v17, %v128_v19 }
  0xa0   :  { %v195_v22 = vadd.f32 %v278_v18, %v194_v20 }
  0xa1   :  { %134 = vst.msk [vmem:[#allocation10] sm:$0xff] %vm104_vm0, %v129_v21  ;;  %v131_v23 = vpop.f32.mrf.mxu3 }
  0xa2   :  { %200 = vst.msk [vmem:[#allocation13] sm:$0xff] %vm104_vm0, %v195_v22  ;;  %v164_v24 = vpop.f32.mrf.mxu1  ;;  %v132_v25 = vadd.f32 %v279_v17, %v131_v23 }
  0xa3   :  { %v165_v26 = vadd.f32 %v277_v14, %v164_v24 }
  0xa4   :  { %135 = vst.msk [vmem:[#allocation10 + $0x8] sm:$0xff] %vm104_vm0, %v132_v25 }
  0xa5   :  { %168 = vst.msk [vmem:[#allocation11 + $0x8] sm:$0xff] %vm104_vm0, %v165_v26  ;;  %214 = dma.vmem_to_hbm [thread:$0]  %s207_s13, 256, %s209_s4, [#allocation4], %s459_s17, %s459_s17, %s460_s18  }
  0xa6   :  { %227 = dma.vmem_to_hbm [thread:$0]  %s220_s19, 256, %s222_s21, [#allocation12], %s459_s17, %s459_s17, %s460_s18  }
  0xa7   :  { %v197_v27 = vpop.f32.mrf.mxu2 }
  0xa8   :  { %v198_v28 = vadd.f32 %v278_v18, %v197_v27 }
  0xaa   :  { %201 = vst.msk [vmem:[#allocation13 + $0x8] sm:$0xff] %vm104_vm0, %v198_v28 }
  0xab   :  { %240 = dma.vmem_to_hbm [thread:$0]  %s233_s7, 256, %s235_s8, [#allocation12], %s459_s17, %s459_s17, %s460_s18  }
  0xac   :  { %454 = dma.done.wait [#allocation4], 256  }
  0xad   :  { %455 = vsyncadd [#allocation4], 4294967040 }
  0xae   :  { %456 = dma.done.wait [#allocation12], 512  }
  0xaf   :  { %457 = vsyncadd [#allocation12], 4294966784 }
  0xb0   :  { %253 = vsyncpa [#allocation3], 1 }
  0xb1   :  { %254 = vsyncpa [#allocation6], 1 }
  0xb2   :  { %255 = vsyncpa [#allocation9], 1 }
  0xb3   :  { %256 = vsyncpa [#allocation4], 1 }
  0xb4   :  { %257 = vsyncpa [#allocation12], 1 }

</bundles_post_ra>
